<compile_context>
chip_gen: v6e
topology: v6e:2x2x1
jax: 0.10.0
libtpu: 0.0.40
codegen_flags: <defaults>
</compile_context>

<pallas_src>
import functools

import jax
import jax.numpy as jnp
import numpy as np
from jax.experimental import pallas as pl
from jax.experimental.pallas import tpu as pltpu

_NEG_LARGE = float(jnp.finfo(jnp.float32).min / 2)   # finite "-inf" sentinel


def _log_ce_kernel(y_ref, t_ref, cl_ref, ce_ref, mx_ref, sm_ref, *, n_rows):
    i = pl.program_id(0)

    y = y_ref[...].astype(jnp.float32)                  # (TN, C)
    t = t_ref[...]                                      # (TN, 1) int32 target col
    cl = cl_ref[...]                                    # (TN, 1) f32 correct logit
    tn, c_dim = y.shape

    diff = y - cl                                       # exactly 0 at target column
    col = jax.lax.broadcasted_iota(jnp.int32, (tn, c_dim), 1)
    masked = jnp.where(col == t, _NEG_LARGE, diff)      # single full-tile select

    # target-excluded row max / sum / logsumexp in one exp pass; the target
    # lane underflows to exactly 0 because exp(_NEG_LARGE - m_ex) == 0.
    m_ex = jnp.max(masked, axis=1, keepdims=True)                       # (TN, 1)
    s_ex = jnp.sum(jnp.exp(masked - m_ex), axis=1, keepdims=True)       # (TN, 1)
    lse_ex = m_ex + jnp.log(s_ex)                       # log sum_{j != t} exp(diff_ij)

    # branch-1 per-row term: log1p(sum_{j != t} exp(diff)) == softplus(lse_ex)
    sp = jnp.maximum(lse_ex, 0.0) + jnp.log1p(jnp.exp(-jnp.abs(lse_ex)))

    # row-validity mask for the (possibly padded) last tile -- keep *selects*,
    # never multiply by the mask (padded-row Inf/NaN must not leak).
    row = jax.lax.broadcasted_iota(jnp.int32, (tn, 1), 0)
    valid = (i * tn + row) < n_rows                                     # (TN, 1)

    ce_tile = jnp.sum(jnp.where(valid, sp, 0.0), axis=0, keepdims=True)       # (1,1)
    m_v = jnp.where(valid, m_ex, _NEG_LARGE)
    tile_max = jnp.max(m_v, axis=0, keepdims=True)                            # (1,1)
    lse_v = jnp.where(valid, lse_ex, -jnp.inf)
    tile_sum = jnp.sum(jnp.exp(lse_v - tile_max), axis=0, keepdims=True)      # (1,1)

    # lane-aligned partial outputs: one broadcast (8, 128) block per grid step.
    ce_ref[...] = jnp.broadcast_to(ce_tile.reshape(1, 1, 1), ce_ref.shape)
    mx_ref[...] = jnp.broadcast_to(tile_max.reshape(1, 1, 1), mx_ref.shape)
    sm_ref[...] = jnp.broadcast_to(tile_sum.reshape(1, 1, 1), sm_ref.shape)


def _vmem_capacity_bytes():
    try:
        return int(pltpu.get_tpu_info().vmem_capacity_bytes)
    except Exception:                                    # pragma: no cover
        return 64 << 20                                  # conservative (v7x-sized)


def _pick_tile_rows(n, c, itemsize):
    """Rows per tile, generation-aware, sized by the in-kernel f32 working set."""
    vmem_cap = _vmem_capacity_bytes()
    sub = 8 * max(1, 4 // itemsize)                      # 8 f32 / 16 bf16 / 32 int8
    # target size of the f32 logits tile itself (per perf review: 8-16 MiB)
    target_f32 = (16 << 20) if vmem_cap >= (96 << 20) else (8 << 20)
    # working-set per row: double-buffered input block + ~4 live f32 temporaries
    per_row_ws = max(1, c * (2 * itemsize + 4 * 4))
    ws_cap = int(vmem_cap * 0.70)                        # headroom for targets/partials/scratch
    tn_target = max(sub, (target_f32 // max(1, c * 4)) // sub * sub)
    tn_cap = max(sub, (ws_cap // per_row_ws) // sub * sub)
    n_pad = ((n + sub - 1) // sub) * sub
    return int(max(sub, min(tn_target, tn_cap, n_pad)))


def log_cross_entropy_loss(y, target):
    n, c = y.shape
    itemsize = jnp.dtype(y.dtype).itemsize
    tn = _pick_tile_rows(n, c, itemsize)
    num_tiles = int(-(-n // tn))

    t2 = target.astype(jnp.int32).reshape(n, 1)
    # correct logit gathered once in the wrapper (negligible vs streaming y)
    cl = jnp.take_along_axis(y, t2, axis=1).astype(jnp.float32)

    # scoped VMEM: double-buffered input block + ~4 (TN, C) f32 temps + slack
    vmem_cap = _vmem_capacity_bytes()
    ws = 2 * tn * c * itemsize + 4 * tn * c * 4 + 8 * tn * 4
    vmem_limit = int(max(32 << 20, min(ws + (8 << 20), int(vmem_cap * 0.9))))

    part_shape = jax.ShapeDtypeStruct((num_tiles, 8, 128), jnp.float32)
    part_spec = pl.BlockSpec((1, 8, 128), lambda i: (i, 0, 0))

    ce_p, mx_p, sm_p = pl.pallas_call(
        functools.partial(_log_ce_kernel, n_rows=n),
        out_shape=(part_shape, part_shape, part_shape),
        grid=(num_tiles,),
        in_specs=[
            pl.BlockSpec((tn, c), lambda i: (i, 0)),
            pl.BlockSpec((tn, 1), lambda i: (i, 0)),
            pl.BlockSpec((tn, 1), lambda i: (i, 0)),
        ],
        out_specs=(part_spec, part_spec, part_spec),
        compiler_params=pltpu.CompilerParams(
            dimension_semantics=("parallel",),   # independent tiles -> both TCs on v7x
            vmem_limit_bytes=vmem_limit,
        ),
        cost_estimate=pl.CostEstimate(
            flops=int(8 * n * c),
            transcendentals=int(n * c),
            bytes_accessed=int(n * c * itemsize + 8 * n + 3 * num_tiles * 8 * 128 * 4),
        ),
    )(y, t2, cl)

    # tiny combine in plain JAX (also serves as the cross-core merge on v7x)
    ce_parts = ce_p[:, 0, 0]
    max_parts = mx_p[:, 0, 0]
    sum_parts = sm_p[:, 0, 0]
    gmax = jnp.max(max_parts)
    gsum = jnp.sum(sum_parts * jnp.exp(max_parts - gmax))
    branch1 = jnp.log(jnp.sum(ce_parts))                 # diff.max() >= -30 path
    branch2 = gmax + jnp.log(gsum)                       # global logsumexp path
    return jnp.where(gmax >= -30.0, branch1, branch2).astype(y.dtype)


if __name__ == "__main__":
    def ref_np(y, tgt):
        # float64 numpy reference mirroring the PyTorch module
        yn = np.asarray(jnp.asarray(y, jnp.float32), dtype=np.float64)
        t = np.asarray(tgt)
        n, c = yn.shape
        corr = yn[np.arange(n), t]
        mask = np.ones((n, c), dtype=bool)
        mask[np.arange(n), t] = False
        w = yn[mask].reshape(n, c - 1)
        diff = w - corr[:, None]
        if diff.max() >= -30:
            return np.log(np.sum(np.log1p(np.sum(np.exp(diff), axis=1))))
        m = diff.max()
        return m + np.log(np.sum(np.exp(diff - m)))

    key = jax.random.PRNGKey(0)

    # case 1: ordinary logits -> branch 1
    k1, k2, key = jax.random.split(key, 3)
    n1, c1 = 16, 32
    x1 = jax.random.normal(k1, (n1, c1), dtype=jnp.float32)
    t1 = jax.random.randint(k2, (n1,), 0, c1, dtype=jnp.int32)
    o1 = jax.block_until_ready(log_cross_entropy_loss(x1, t1))
    r1 = ref_np(x1, t1)
    assert np.allclose(float(o1), r1, rtol=1e-4, atol=1e-3), (float(o1), r1)

    # case 2: N not a multiple of the row tile (exercises in-kernel row mask)
    k1, k2, key = jax.random.split(key, 3)
    n2, c2 = 13, 40
    x2 = jax.random.normal(k1, (n2, c2), dtype=jnp.float32)
    t2 = jax.random.randint(k2, (n2,), 0, c2, dtype=jnp.int32)
    o2 = jax.block_until_ready(log_cross_entropy_loss(x2, t2))
    r2 = ref_np(x2, t2)
    assert np.allclose(float(o2), r2, rtol=1e-4, atol=1e-3), (float(o2), r2)

    # case 3: correct logit dominates -> diff.max() < -30 -> global logsumexp branch
    k1, k2, key = jax.random.split(key, 3)
    n3, c3 = 8, 32
    x3 = jax.random.normal(k1, (n3, c3), dtype=jnp.float32)
    t3 = jax.random.randint(k2, (n3,), 0, c3, dtype=jnp.int32)
    x3 = x3.at[jnp.arange(n3), t3].add(100.0)
    o3 = jax.block_until_ready(log_cross_entropy_loss(x3, t3))
    r3 = ref_np(x3, t3)
    assert np.allclose(float(o3), r3, rtol=1e-4, atol=1e-3), (float(o3), r3)

    # case 4: bf16 input (exercises dtype-aware tile/VMEM budgeting; bf16 output tol)
    k1, k2, key = jax.random.split(key, 3)
    n4, c4 = 40, 256
    x4 = jax.random.normal(k1, (n4, c4), dtype=jnp.float32).astype(jnp.bfloat16)
    t4 = jax.random.randint(k2, (n4,), 0, c4, dtype=jnp.int32)
    o4 = jax.block_until_ready(log_cross_entropy_loss(x4, t4))
    r4 = ref_np(x4, t4)
    assert np.allclose(float(o4), r4, rtol=2e-2, atol=5e-2), (float(o4), r4)

    print("KERNEL_OK")
</pallas_src>

<mosaic_0001>
module attributes {stable_mosaic.version = 11 : i64} {
  func.func @_log_ce_kernel(%arg0: i32, %arg1: memref<16x32xf32, #tpu.memory_space<vmem>>, %arg2: memref<16x1xi32, #tpu.memory_space<vmem>>, %arg3: memref<16x1xf32, #tpu.memory_space<vmem>>, %arg4: memref<1x8x128xf32, #tpu.memory_space<vmem>>, %arg5: memref<1x8x128xf32, #tpu.memory_space<vmem>>, %arg6: memref<1x8x128xf32, #tpu.memory_space<vmem>>) attributes {dimension_semantics = [#tpu.dimension_semantics<parallel>], iteration_bounds = array<i64: 1>, scalar_prefetch = 0 : i64, scratch_operands = 0 : i64, tpu.core_type = #tpu.core_type<tc>, window_params = [{transform_indices = @transform_0, window_bounds = array<i64: 16, 32>}, {transform_indices = @transform_1, window_bounds = array<i64: 16, 1>}, {transform_indices = @transform_2, window_bounds = array<i64: 16, 1>}, {transform_indices = @transform_3, window_bounds = array<i64: 1, 8, 128>}, {transform_indices = @transform_4, window_bounds = array<i64: 1, 8, 128>}, {transform_indices = @transform_5, window_bounds = array<i64: 1, 8, 128>}]} {
    %c0 = arith.constant 0 : index
    %c0_0 = arith.constant 0 : index
    %0 = vector.load %arg1[%c0, %c0_0] : memref<16x32xf32, #tpu.memory_space<vmem>>, vector<16x32xf32>
    %c0_1 = arith.constant 0 : index
    %c0_2 = arith.constant 0 : index
    %1 = vector.load %arg2[%c0_1, %c0_2] : memref<16x1xi32, #tpu.memory_space<vmem>>, vector<16x1xi32>
    %c0_3 = arith.constant 0 : index
    %c0_4 = arith.constant 0 : index
    %2 = vector.load %arg3[%c0_3, %c0_4] : memref<16x1xf32, #tpu.memory_space<vmem>>, vector<16x1xf32>
    %3 = vector.broadcast %2 : vector<16x1xf32> to vector<16x32xf32>
    %4 = arith.subf %0, %3 : vector<16x32xf32>
    %5 = tpu.iota {dimensions = array<i32: 1>} : vector<16x32xi32>
    %6 = vector.broadcast %1 : vector<16x1xi32> to vector<16x32xi32>
    %7 = arith.cmpi eq, %5, %6 : vector<16x32xi32>
    %cst = arith.constant -1.70141173E+38 : f32
    %8 = vector.broadcast %cst : f32 to vector<16x32xf32>
    %9 = arith.select %7, %8, %4 : vector<16x32xi1>, vector<16x32xf32>
    %cst_5 = arith.constant dense<0xFF800000> : vector<16xf32>
    %10 = vector.multi_reduction <maximumf>, %9, %cst_5 [1] : vector<16x32xf32> to vector<16xf32>
    %11 = vector.shape_cast %10 : vector<16xf32> to vector<16x1xf32>
    %12 = vector.broadcast %11 : vector<16x1xf32> to vector<16x32xf32>
    %13 = arith.subf %9, %12 : vector<16x32xf32>
    %14 = math.exp %13 : vector<16x32xf32>
    %cst_6 = arith.constant dense<0.000000e+00> : vector<16xf32>
    %15 = vector.multi_reduction <add>, %14, %cst_6 [1] : vector<16x32xf32> to vector<16xf32>
    %16 = vector.shape_cast %15 : vector<16xf32> to vector<16x1xf32>
    %17 = math.log %16 : vector<16x1xf32>
    %18 = arith.addf %11, %17 : vector<16x1xf32>
    %cst_7 = arith.constant 0.000000e+00 : f32
    %19 = vector.broadcast %cst_7 : f32 to vector<16x1xf32>
    %20 = arith.maximumf %18, %19 : vector<16x1xf32>
    %21 = math.absf %18 : vector<16x1xf32>
    %cst_8 = arith.constant 0.000000e+00 : f32
    %22 = vector.broadcast %cst_8 : f32 to vector<16x1xf32>
    %23 = arith.subf %22, %21 : vector<16x1xf32>
    %24 = math.exp %23 : vector<16x1xf32>
    %25 = math.log1p %24 : vector<16x1xf32>
    %26 = arith.addf %20, %25 : vector<16x1xf32>
    %27 = tpu.iota {dimensions = array<i32: 0>} : vector<16x1xi32>
    %c16_i32 = arith.constant 16 : i32
    %28 = arith.muli %arg0, %c16_i32 : i32
    %29 = vector.broadcast %28 : i32 to vector<16x1xi32>
    %30 = arith.addi %29, %27 : vector<16x1xi32>
    %c16_i32_9 = arith.constant 16 : i32
    %31 = vector.broadcast %c16_i32_9 : i32 to vector<16x1xi32>
    %32 = arith.cmpi slt, %30, %31 : vector<16x1xi32>
    %cst_10 = arith.constant 0.000000e+00 : f32
    %33 = vector.broadcast %cst_10 : f32 to vector<16x1xf32>
    %34 = arith.select %32, %26, %33 : vector<16x1xi1>, vector<16x1xf32>
    %cst_11 = arith.constant dense<0.000000e+00> : vector<1xf32>
    %35 = vector.multi_reduction <add>, %34, %cst_11 [0] : vector<16x1xf32> to vector<1xf32>
    %36 = vector.shape_cast %35 : vector<1xf32> to vector<1x1xf32>
    %cst_12 = arith.constant -1.70141173E+38 : f32
    %37 = vector.broadcast %cst_12 : f32 to vector<16x1xf32>
    %38 = arith.select %32, %11, %37 : vector<16x1xi1>, vector<16x1xf32>
    %cst_13 = arith.constant dense<0xFF800000> : vector<1xf32>
    %39 = vector.multi_reduction <maximumf>, %38, %cst_13 [0] : vector<16x1xf32> to vector<1xf32>
    %40 = vector.shape_cast %39 : vector<1xf32> to vector<1x1xf32>
    %cst_14 = arith.constant 0xFF800000 : f32
    %41 = vector.broadcast %cst_14 : f32 to vector<16x1xf32>
    %42 = arith.select %32, %18, %41 : vector<16x1xi1>, vector<16x1xf32>
    %43 = vector.broadcast %40 : vector<1x1xf32> to vector<16x1xf32>
    %44 = arith.subf %42, %43 : vector<16x1xf32>
    %45 = math.exp %44 : vector<16x1xf32>
    %cst_15 = arith.constant dense<0.000000e+00> : vector<1xf32>
    %46 = vector.multi_reduction <add>, %45, %cst_15 [0] : vector<16x1xf32> to vector<1xf32>
    %47 = vector.shape_cast %46 : vector<1xf32> to vector<1x1xf32>
    %48 = vector.shape_cast %36 : vector<1x1xf32> to vector<1x1x1xf32>
    %49 = vector.shape_cast %48 : vector<1x1x1xf32> to vector<1x1x1xf32>
    %50 = vector.broadcast %49 : vector<1x1x1xf32> to vector<1x8x128xf32>
    %c0_16 = arith.constant 0 : index
    %c0_17 = arith.constant 0 : index
    %c0_18 = arith.constant 0 : index
    %51 = vector.load %arg4[%c0_16, %c0_17, %c0_18] : memref<1x8x128xf32, #tpu.memory_space<vmem>>, vector<1x8x128xf32>
    tpu.vector_store %arg4[%c0_16, %c0_17, %c0_18], %50 {strides = array<i32>} : memref<1x8x128xf32, #tpu.memory_space<vmem>>, vector<1x8x128xf32>,
    %52 = vector.shape_cast %40 : vector<1x1xf32> to vector<1x1x1xf32>
    %53 = vector.shape_cast %52 : vector<1x1x1xf32> to vector<1x1x1xf32>
    %54 = vector.broadcast %53 : vector<1x1x1xf32> to vector<1x8x128xf32>
    %c0_19 = arith.constant 0 : index
    %c0_20 = arith.constant 0 : index
    %c0_21 = arith.constant 0 : index
    %55 = vector.load %arg5[%c0_19, %c0_20, %c0_21] : memref<1x8x128xf32, #tpu.memory_space<vmem>>, vector<1x8x128xf32>
    tpu.vector_store %arg5[%c0_19, %c0_20, %c0_21], %54 {strides = array<i32>} : memref<1x8x128xf32, #tpu.memory_space<vmem>>, vector<1x8x128xf32>,
    %56 = vector.shape_cast %47 : vector<1x1xf32> to vector<1x1x1xf32>
    %57 = vector.shape_cast %56 : vector<1x1x1xf32> to vector<1x1x1xf32>
    %58 = vector.broadcast %57 : vector<1x1x1xf32> to vector<1x8x128xf32>
    %c0_22 = arith.constant 0 : index
    %c0_23 = arith.constant 0 : index
    %c0_24 = arith.constant 0 : index
    %59 = vector.load %arg6[%c0_22, %c0_23, %c0_24] : memref<1x8x128xf32, #tpu.memory_space<vmem>>, vector<1x8x128xf32>
    tpu.vector_store %arg6[%c0_22, %c0_23, %c0_24], %58 {strides = array<i32>} : memref<1x8x128xf32, #tpu.memory_space<vmem>>, vector<1x8x128xf32>,
    return
  }
  func.func @transform_0(%arg0: i32) -> (i32, i32) {
    %c0_i32 = arith.constant 0 : i32
    %c0_i32_0 = arith.constant 0 : i32
    return %arg0, %c0_i32 : i32, i32
  }
  func.func @transform_1(%arg0: i32) -> (i32, i32) {
    %c0_i32 = arith.constant 0 : i32
    %c0_i32_0 = arith.constant 0 : i32
    return %arg0, %c0_i32 : i32, i32
  }
  func.func @transform_2(%arg0: i32) -> (i32, i32) {
    %c0_i32 = arith.constant 0 : i32
    %c0_i32_0 = arith.constant 0 : i32
    return %arg0, %c0_i32 : i32, i32
  }
  func.func @transform_3(%arg0: i32) -> (i32, i32, i32) {
    %c0_i32 = arith.constant 0 : i32
    %c0_i32_0 = arith.constant 0 : i32
    %c0_i32_1 = arith.constant 0 : i32
    return %arg0, %c0_i32, %c0_i32_0 : i32, i32, i32
  }
  func.func @transform_4(%arg0: i32) -> (i32, i32, i32) {
    %c0_i32 = arith.constant 0 : i32
    %c0_i32_0 = arith.constant 0 : i32
    %c0_i32_1 = arith.constant 0 : i32
    return %arg0, %c0_i32, %c0_i32_0 : i32, i32, i32
  }
  func.func @transform_5(%arg0: i32) -> (i32, i32, i32) {
    %c0_i32 = arith.constant 0 : i32
    %c0_i32_0 = arith.constant 0 : i32
    %c0_i32_1 = arith.constant 0 : i32
    return %arg0, %c0_i32, %c0_i32_0 : i32, i32, i32
  }
}

</mosaic_0001>

<bundles_post_ra>
// kernel: tpu_custom_call.1
= control target key start
LH: loop header
LB: loop body
LE: loop exit
PB: predicated region body
PF: predicated region fallthrough
CT: control target
= control target key end

     0   :  { %11 = vsyncpa [#allocation3], 0  ;;  %v280_v2 = vmov 0   ;;  %s350_s0 = inlined_call_operand.vmem [shape: f32[16,32], index: 0, kind: input, shape index: {}]   ;;  %s351_s1 = inlined_call_operand.vmem [shape: s32[16,1], index: 1, kind: input, shape index: {}]   ;;  %s352_s2 = inlined_call_operand.vmem [shape: f32[16,1], index: 2, kind: input, shape index: {}]   ;;  %s353_s3 = inlined_call_operand.hbm [shape: f32[1,8,128], index: 3, kind: output, shape index: {0}]   ;;  %s354_s4 = inlined_call_operand.hbm [shape: f32[1,8,128], index: 4, kind: output, shape index: {1}]   ;;  %s355_s5 = inlined_call_operand.hbm [shape: f32[1,8,128], index: 5, kind: output, shape index: {2}]  }
   0x1   :  { %v23_v0 = vld [vmem:[%s352_s2] sm:$0xff]  ;;  %195 = vset.pattern.permute.xlu1 %v280_v2  ;;  %194 = vset.pattern.permute.xlu0 %v280_v2 }
   0x2   :  { %v21_v1 = vld [vmem:[%s351_s1] sm:$0xff]  ;;  %27 = vperm.xlu0 %194, %v23_v0  }
   0x3   :  { %40 = vperm.xlu1 %195, %v21_v1  }
   0x4   :  { %12 = vsyncpa [#allocation5], 0  ;;  %v24_v3 = vld [vmem:[%s352_s2 + $0x8] sm:$0xff]  ;;  %v37_v5 = vlaneseq  ;;  %v19_v7 = vld [vmem:[%s350_s0] sm:$0xff]  ;;  %vm49_vm1 = vcmask 261120  }
   0x5   :  { %v22_v4 = vld [vmem:[%s351_s1 + $0x8] sm:$0xff] }
   0x6   :  { %32 = vperm.xlu0 %194, %v24_v3   ;;  %v38_v6 = vand.u32 127, %v37_v5  ;;  %v20_v11 = vld [vmem:[%s350_s0 + $0x8] sm:$0xff]  ;;  %s281_s0 = smov [#allocation4]  }
   0x7   :  { %43 = vperm.xlu1 %195, %v22_v4   ;;  %s165_s1 = sshll.u32 %s281_s0, 4  ;;  %s166_s1 = int_to_ptr.vmem [resolvable:$true] %s165_s1 }
   0x8   :  { %s216_s2 = scalar_lea.vmem %s166_s1, 128  ;;  %p221_p1 = scmp.lt.s32.totalorder %s166_s1, %s166_s1 }
   0x9   :  { %p217_p0 = scmp.ne.s32.totalorder %s166_s1, %s216_s2  ;;  %p222_p2 = scmp.lt.s32.totalorder %s216_s2, %s216_s2 }
   0xb   :  { %p223_p3 = por %p222_p2, %p221_p1 }
   0xd   :  { %p224_p4 = pnand %p223_p3, %p217_p0 }
  0x7d   :  { %v28_v8 = vpop.permute.xlu0 %27 }
  0x7e   :  { %v41_v9 = vpop.permute.xlu1 %40  ;;  %v35_v10 = vsub.f32 %v19_v7, %v28_v8 }
  0x7f   :  { %vm45_vm0 = vcmp.eq.s32.totalorder %v38_v6, %v41_v9 }
  0x80   :  { %v47_v12 = vsel %vm45_vm0, -1.7014117e+38, %v35_v10 }
  0x81   :  { %v33_v13 = vpop.permute.xlu0 %32  ;;  %v50_v15 = vsel %vm49_vm1, %v47_v12, -inf }
  0x82   :  { %v44_v14 = vpop.permute.xlu1 %43  ;;  %v36_v16 = vsub.f32 %v20_v11, %v33_v13  ;;  %51 = vmax.xlane.f32.xlu0 %v50_v15 }
  0x83   :  { %vm46_vm2 = vcmp.eq.s32.totalorder %v38_v6, %v44_v14 }
  0x84   :  { %v48_v17 = vsel %vm46_vm2, -1.7014117e+38, %v36_v16 }
  0x85   :  { %v53_v18 = vsel %vm49_vm1, %v48_v17, -inf }
  0x86   :  { %54 = vmax.xlane.f32.xlu1 %v53_v18 }
 0x10b   :  { %v52_v19 = vpop.xlane.xlu0 %51 }
 0x10c   :  { %v56_v20 = vsub.f32 %v47_v12, %v52_v19 }
 0x10e   :  { %v58_v21 = vmul.f32 1.442695, %v56_v20 }
 0x10f   :  { %v55_v22 = vpop.xlane.xlu1 %54 }
 0x110   :  { %196 = vpow2.f32 %v58_v21  ;;  %v57_v23 = vsub.f32 %v48_v17, %v55_v22  ;;  %v124_v24 = vmax.f32 %v52_v19, %v55_v22 }
 0x112   :  { %v60_v25 = vmul.f32 1.442695, %v57_v23  ;;  %v125_v26 = vrot.slane %v124_v24, 4 }
 0x114   :  { %198 = vpow2.f32 %v60_v25  ;;  %v126_v27 = vmax.f32 %v124_v24, %v125_v26 }
 0x116   :  { %v127_v28 = vrot.slane %v126_v27, 2 }
 0x118   :  { %v128_v29 = vmax.f32 %v126_v27, %v127_v28 }
 0x11a   :  { %v129_v30 = vrot.slane %v128_v29, 1 }
 0x11c   :  { %v130_v31 = vmax.f32 %v128_v29, %v129_v30 }
 0x11d   :  { %v197_v32 = vpop.eup %196 }
 0x11e   :  { %v62_v33 = vsel %vm49_vm1, %v197_v32, 0.0  ;;  %147 = vst [vmem:[#allocation4] sm:$0xff] %v130_v31 }
 0x11f   :  { %63 = vadd.xlane.f32.xlu0 %v62_v33 }
 0x121   :  { %v199_v34 = vpop.eup %198 }
 0x122   :  { %v65_v35 = vsel %vm49_vm1, %v199_v34, 0.0 }
 0x123   :  { %66 = vadd.xlane.f32.xlu0 %v65_v35 }
 0x124   :  { %227 = shalt.err (!%p224_p4)
}
 0x125   :  { %168 = dma.vmem_to_hbm [thread:$0]  %s166_s1, 128, %s354_s4, [#allocation5]  }
 0x126   :  { %s282_s4 = smov [#allocation6]  }
 0x127   :  { %s175_s7 = sshll.u32 %s282_s4, 4  ;;  %s176_s7 = int_to_ptr.vmem [resolvable:$true] %s175_s7 }
 0x128   :  { %s236_s8 = scalar_lea.vmem %s176_s7, 128  ;;  %p241_p6 = scmp.lt.s32.totalorder %s176_s7, %s176_s7 }
 0x129   :  { %p237_p5 = scmp.ne.s32.totalorder %s176_s7, %s236_s8  ;;  %p242_p7 = scmp.lt.s32.totalorder %s236_s8, %s236_s8 }
 0x12b   :  { %p243_p8 = por %p242_p7, %p241_p6 }
 0x12d   :  { %p244_p9 = pnand %p243_p8, %p237_p5 }
 0x1a8   :  { %v64_v36 = vpop.xlane.xlu0 %63 }
 0x1a9   :  { %200 = vlog2.f32 %v64_v36 }
 0x1ac   :  { %v67_v37 = vpop.xlane.xlu0 %66 }
 0x1ad   :  { %202 = vlog2.f32 %v67_v37 }
 0x1b6   :  { %v201_v38 = vpop.eup %200 }
 0x1b7   :  { %v69_v39 = vmul.f32 0.6931472, %v201_v38 }
 0x1b9   :  { %v339_v40 = vadd.f32 %v69_v39, %v52_v19 }
 0x1ba   :  { %v203_v41 = vpop.eup %202 }
 0x1bb   :  { %v76_v42 = vand.u32 2147483647, %v339_v40  ;;  %v71_v43 = vmul.f32 0.6931472, %v203_v41  ;;  %v133_v44 = vsub.f32 %v339_v40, %v130_v31 }
 0x1bd   :  { %v78_v45 = vsub.f32 0.0, %v76_v42  ;;  %v73_v46 = vadd.f32 %v71_v43, %v55_v22  ;;  %v135_v47 = vmul.f32 1.442695, %v133_v44 }
 0x1bf   :  { %v80_v48 = vmul.f32 1.442695, %v78_v45  ;;  %v77_v49 = vand.u32 2147483647, %v73_v46  ;;  %v134_v50 = vsub.f32 %v73_v46, %v130_v31 }
 0x1c1   :  { %204 = vpow2.f32 %v80_v48  ;;  %v79_v51 = vsub.f32 0.0, %v77_v49  ;;  %v137_v52 = vmul.f32 1.442695, %v134_v50 }
 0x1c2   :  { %206 = vpow2.f32 %v135_v47 }
 0x1c3   :  { %v82_v53 = vmul.f32 1.442695, %v79_v51  ;;  %208 = vpow2.f32 %v137_v52 }
 0x1c5   :  { %210 = vpow2.f32 %v82_v53 }
 0x1ce   :  { %v205_v54 = vpop.eup %204 }
 0x1cf   :  { %v207_v55 = vpop.eup %206  ;;  %v84_v56 = vadd.f32 1.0, %v205_v54  ;;  %v87_v0 = vmul.f32 -0.5, %v205_v54  ;;  %v90_v6 = vand.u32 2147483647, %v205_v54 }
 0x1d0   :  { %v209_v57 = vpop.eup %208 }
 0x1d1   :  { %212 = vlog2.f32 %v84_v56  ;;  %v139_v58 = vadd.f32 %v209_v57, %v207_v55  ;;  %v88_v4 = vadd.f32 1.0, %v87_v0 }
 0x1d2   :  { %v211_v59 = vpop.eup %210 }
 0x1d3   :  { %v93_v60 = vadd.f32 1.0, %v211_v59  ;;  %v140_v61 = vrot.slane %v139_v58, 4  ;;  %v96_v2 = vmul.f32 -0.5, %v211_v59  ;;  %v99_v10 = vand.u32 2147483647, %v211_v59 }
 0x1d4   :  { %v89_v11 = vmul.f32 %v205_v54, %v88_v4 }
 0x1d5   :  { %214 = vlog2.f32 %v93_v60  ;;  %v141_v62 = vadd.f32 %v140_v61, %v139_v58  ;;  %v97_v9 = vadd.f32 1.0, %v96_v2 }
 0x1d7   :  { %v142_v63 = vrot.slane %v141_v62, 2 }
 0x1d9   :  { %v143_v1 = vadd.f32 %v142_v63, %v141_v62 }
 0x1db   :  { %v144_v3 = vrot.slane %v143_v1, 1 }
 0x1dd   :  { %v145_v7 = vadd.f32 %v144_v3, %v143_v1 }
 0x1de   :  { %v213_v5 = vpop.eup %212 }
 0x1df   :  { %v86_v8 = vmul.f32 0.6931472, %v213_v5  ;;  %148 = vst [vmem:[#allocation6] sm:$0xff] %v145_v7 }
 0x1e0   :  { %247 = shalt.err (!%p244_p9)
}
 0x1e1   :  { %178 = dma.vmem_to_hbm [thread:$0]  %s176_s7, 128, %s355_s5, [#allocation5]   ;;  %vm91_vm3 = vcmp.lt.f32.partialorder %v90_v6, 0.0004427343  ;;  %v98_v15 = vmul.f32 %v211_v59, %v97_v9  ;;  %v74_v16 = vmax.f32 %v339_v40, 0.0  ;;  %v75_v17 = vmax.f32 %v73_v46, 0.0 }
 0x1e2   :  { %v215_v12 = vpop.eup %214  ;;  %v92_v13 = vsel %vm91_vm3, %v89_v11, %v86_v8  ;;  %vm100_vm4 = vcmp.lt.f32.partialorder %v99_v10, 0.0004427343  ;;  %s283_s11 = smov [#allocation2]  }
 0x1e3   :  { %v95_v14 = vmul.f32 0.6931472, %v215_v12  ;;  %v102_v19 = vadd.f32 %v92_v13, %v74_v16  ;;  %s155_s12 = sshll.u32 %s283_s11, 4  ;;  %s156_s12 = int_to_ptr.vmem [resolvable:$true] %s155_s12 }
 0x1e4   :  { %s256_s5 = scalar_lea.vmem %s156_s12, 128  ;;  %p261_p11 = scmp.lt.s32.totalorder %s156_s12, %s156_s12 }
 0x1e5   :  { %v101_v18 = vsel %vm100_vm4, %v98_v15, %v95_v14  ;;  %p257_p10 = scmp.ne.s32.totalorder %s156_s12, %s256_s5  ;;  %p262_p12 = scmp.lt.s32.totalorder %s256_s5, %s256_s5 }
 0x1e6   :  { %v103_v20 = vadd.f32 %v101_v18, %v75_v17 }
 0x1e7   :  { %p263_p13 = por %p262_p12, %p261_p11 }
 0x1e8   :  { %v115_v21 = vadd.f32 %v103_v20, %v102_v19 }
 0x1e9   :  { %p264_p0 = pnand %p263_p13, %p257_p10 }
 0x1ea   :  { %v116_v22 = vrot.slane %v115_v21, 4 }
 0x1ec   :  { %v117_v23 = vadd.f32 %v116_v22, %v115_v21 }
 0x1ee   :  { %v118_v24 = vrot.slane %v117_v23, 2 }
 0x1f0   :  { %v119_v25 = vadd.f32 %v118_v24, %v117_v23 }
 0x1f2   :  { %v120_v26 = vrot.slane %v119_v25, 1 }
 0x1f4   :  { %v121_v27 = vadd.f32 %v120_v26, %v119_v25 }
 0x1f6   :  { %146 = vst [vmem:[#allocation2] sm:$0xff] %v121_v27 }
 0x1f7   :  { %267 = shalt.err (!%p264_p0)
}
 0x1f8   :  { %158 = dma.vmem_to_hbm [thread:$0]  %s156_s12, 128, %s353_s3, [#allocation3]  }
 0x1f9   :  { %276 = dma.done.wait [#allocation3], 128  }
 0x1fa   :  { %277 = vsyncadd [#allocation3], 4294967168 }
 0x1fb   :  { %278 = dma.done.wait [#allocation5], 256  }
 0x1fc   :  { %279 = vsyncadd [#allocation5], 4294967040 }
 0x1fd   :  { %188 = vsyncpa [#allocation3], 1 }
 0x1fe   :  { %189 = vsyncpa [#allocation5], 1 }

</bundles_post_ra>
